<compile_context>
chip_gen: v7x
topology: tpu7x:2x2x1
jax: 0.10.0
libtpu: 0.0.40
codegen_flags: <defaults>
</compile_context>

<pallas_src>
import jax
import jax.numpy as jnp
from jax.experimental import pallas as pl
from jax.experimental.pallas import tpu as pltpu

_LANE = 128


def _choose_batch_block(batch, bytes_per_batch):
    """Pick batches-per-step: >=4 grid steps when possible (v7x megacore,
    pipelining), aim for >=512 KiB of feature DMA per step, and keep the
    double-buffered footprint well under the scoped VMEM limit."""
    max_bt = batch if batch < 4 else max(1, batch // 4)
    max_bt = min(max_bt, 8)
    bt = 1
    for cand in range(2, max_bt + 1):
        if batch % cand:
            continue
        if 2 * cand * bytes_per_batch > 4 * 1024 * 1024:   # double-buffer cap
            break
        bt = cand
        if cand * bytes_per_batch >= 512 * 1024:
            break
    return bt


def _off_smooth_l1_kernel(hi_ref, lo_ref, mask_ref, feat_ref, tgt_ref, out_ref):
    # Block shapes per grid step:
    #   hi_ref, lo_ref : (Bt, K, 1) int32   (ind // 128, ind % 128)
    #   mask_ref       : (Bt, K, 1) float32
    #   feat_ref       : (Bt, C, NB, 128)   feature map, native dtype
    #   tgt_ref        : (Bt, K, C)
    #   out_ref        : (1, 2) float32     [masked smooth-L1 sum, mask count]
    bt, n_ch, nb, lane = feat_ref.shape
    k = hi_ref.shape[1]
    feat_dtype = feat_ref.dtype
    prec = jax.lax.Precision.HIGHEST if feat_dtype == jnp.float32 else None

    nb_iota = jax.lax.broadcasted_iota(jnp.int32, (k, nb), 1)
    lane_iota = jax.lax.broadcasted_iota(jnp.int32, (k, lane), 1)

    loss_acc = jnp.zeros((1, 1), jnp.float32)
    cnt_acc = jnp.zeros((1, 1), jnp.float32)

    for i in range(bt):                                   # Bt is small & static
        hi_col = hi_ref[i]                                # (K, 1) int32
        lo_col = lo_ref[i]                                # (K, 1) int32
        m_col = mask_ref[i]                               # (K, 1) f32
        tgt_i = tgt_ref[i].astype(jnp.float32)            # (K, C)

        # Stage 1 selector: which 128-wide block each keypoint lives in.
        onehot = (nb_iota == hi_col).astype(feat_dtype)       # (K, NB)
        # Stage 2 selector: which lane inside that block.
        lane_sel = (lane_iota == lo_col).astype(jnp.float32)  # (K, 128)

        for c in range(n_ch):                              # C is small & static
            slab_c = feat_ref[i, c]                        # (NB, 128)
            # Coarse gather on the MXU: row k of `blocks` is the 128-lane
            # block containing keypoint k's value for channel c.
            blocks = jnp.dot(onehot, slab_c,
                             preferred_element_type=jnp.float32,
                             precision=prec)               # (K, 128) f32
            # In-lane select + lane reduce -> gathered prediction.
            pred_c = jnp.sum(blocks * lane_sel, axis=1, keepdims=True)  # (K, 1)

            d = pred_c - tgt_i[:, c:c + 1]
            ad = jnp.abs(d)
            elem = jnp.where(ad < 1.0, 0.5 * d * d, ad - 0.5)   # beta = 1.0
            loss_acc = loss_acc + jnp.sum(elem * m_col, keepdims=True)
        cnt_acc = cnt_acc + jnp.sum(m_col, keepdims=True)

    lane2 = jax.lax.broadcasted_iota(jnp.int32, (1, 2), 1)
    out_ref[...] = jnp.where(lane2 == 0, loss_acc, cnt_acc)


def off_smooth_l1_loss(output, mask, ind, target):
    """output: (B, C, H, W); mask: (B, K) {0,1}; ind: (B, K) int;
    target: (B, K, C).  Returns scalar float32 loss (PyTorch semantics)."""
    B, C, H, W = output.shape
    K = ind.shape[1]
    HW = H * W

    # Free reshape (no transpose, no extra HBM pass): NCHW -> (B, C, HW).
    feat = output.reshape(B, C, HW)
    hw_pad = ((HW + _LANE - 1) // _LANE) * _LANE
    if hw_pad != HW:
        feat = jnp.pad(feat, ((0, 0), (0, 0), (0, hw_pad - HW)))
    nb = hw_pad // _LANE
    feat = feat.reshape(B, C, nb, _LANE)

    ind_i = ind.astype(jnp.int32)
    hi = (ind_i // _LANE)[..., None]                 # (B, K, 1)
    lo = (ind_i % _LANE)[..., None]                  # (B, K, 1)
    mk = mask.astype(jnp.float32)[..., None]         # (B, K, 1)

    bytes_per_batch = C * hw_pad * feat.dtype.itemsize
    bt = _choose_batch_block(B, bytes_per_batch)
    g = B // bt

    grid_spec = pltpu.PrefetchScalarGridSpec(
        num_scalar_prefetch=0,
        grid=(g,),
        in_specs=[
            pl.BlockSpec((bt, K, 1), lambda b: (b, 0, 0)),            # hi
            pl.BlockSpec((bt, K, 1), lambda b: (b, 0, 0)),            # lo
            pl.BlockSpec((bt, K, 1), lambda b: (b, 0, 0)),            # mask
            pl.BlockSpec((bt, C, nb, _LANE), lambda b: (b, 0, 0, 0)),  # feat
            pl.BlockSpec((bt, K, C), lambda b: (b, 0, 0)),            # target
        ],
        out_specs=pl.BlockSpec((1, 2), lambda b: (b, 0)),
    )

    parts = pl.pallas_call(
        _off_smooth_l1_kernel,
        grid_spec=grid_spec,
        out_shape=jax.ShapeDtypeStruct((g, 2), jnp.float32),
        compiler_params=pltpu.CompilerParams(
            dimension_semantics=("parallel",),
            vmem_limit_bytes=32 * 1024 * 1024),
    )(hi, lo, mk, feat, target)

    loss_sum = jnp.sum(parts[:, 0])
    cnt = jnp.sum(parts[:, 1])
    n_sel = cnt * jnp.float32(C)          # masked_select picks C elems per hit
    loss = loss_sum / jnp.maximum(n_sel, jnp.float32(1.0))
    # mask.sum() == 0  ->  module returns 0.0
    return jnp.where(cnt > 0, loss, jnp.float32(0.0))


def _reference(output, mask, ind, target):
    B, C, H, W = output.shape
    feat = jnp.transpose(output, (0, 2, 3, 1)).reshape(B, H * W, C)
    pred = feat[jnp.arange(B)[:, None], ind, :]                # (B, K, C)
    d = pred - target
    ad = jnp.abs(d)
    elem = jnp.where(ad < 1.0, 0.5 * d * d, ad - 0.5)
    m = mask.astype(jnp.float32)[:, :, None]
    n_sel = jnp.sum(mask.astype(jnp.float32)) * C
    loss = jnp.sum(elem * m) / jnp.maximum(n_sel, 1.0)
    return jnp.where(n_sel > 0, loss, 0.0)


if __name__ == "__main__":
    B, C, H, W, K = 2, 2, 16, 16, 8

    key = jax.random.PRNGKey(0)
    k1, k2, k3, k4 = jax.random.split(key, 4)

    output = jax.random.normal(k1, (B, C, H, W), dtype=jnp.float32)
    target = jax.random.normal(k2, (B, K, C), dtype=jnp.float32)
    ind = jax.random.randint(k3, (B, K), 0, H * W, dtype=jnp.int32)
    mask = (jax.random.uniform(k4, (B, K)) > 0.4).astype(jnp.int32)
    mask = mask.at[0, 0].set(1)          # ensure at least one valid entry

    loss = off_smooth_l1_loss(output, mask, ind, target)
    jax.block_until_ready(loss)

    ref = _reference(output, mask, ind, target)
    assert jnp.allclose(loss, ref, atol=1e-5, rtol=1e-5), (loss, ref)

    print("KERNEL_OK")
</pallas_src>

<mosaic_0001>
module attributes {stable_mosaic.version = 11 : i64} {
  func.func @_off_smooth_l1_kernel(%arg0: i32, %arg1: memref<2x8x1xi32, #tpu.memory_space<vmem>>, %arg2: memref<2x8x1xi32, #tpu.memory_space<vmem>>, %arg3: memref<2x8x1xf32, #tpu.memory_space<vmem>>, %arg4: memref<2x2x2x128xf32, #tpu.memory_space<vmem>>, %arg5: memref<2x8x2xf32, #tpu.memory_space<vmem>>, %arg6: memref<1x2xf32, #tpu.memory_space<vmem>>) attributes {dimension_semantics = [#tpu.dimension_semantics<parallel>], iteration_bounds = array<i64: 1>, scalar_prefetch = 0 : i64, scratch_operands = 0 : i64, tpu.core_type = #tpu.core_type<tc>, window_params = [{transform_indices = @transform_0, window_bounds = array<i64: 2, 8, 1>}, {transform_indices = @transform_1, window_bounds = array<i64: 2, 8, 1>}, {transform_indices = @transform_2, window_bounds = array<i64: 2, 8, 1>}, {transform_indices = @transform_3, window_bounds = array<i64: 2, 2, 2, 128>}, {transform_indices = @transform_4, window_bounds = array<i64: 2, 8, 2>}, {transform_indices = @transform_5, window_bounds = array<i64: 1, 2>}]} {
    %0 = tpu.iota {dimensions = array<i32: 1>} : vector<8x2xi32>
    %1 = tpu.iota {dimensions = array<i32: 1>} : vector<8x128xi32>
    %cst = arith.constant 0.000000e+00 : f32
    %2 = vector.broadcast %cst : f32 to vector<1x1xf32>
    %cst_0 = arith.constant 0.000000e+00 : f32
    %3 = vector.broadcast %cst_0 : f32 to vector<1x1xf32>
    %c0 = arith.constant 0 : index
    %c0_1 = arith.constant 0 : index
    %c0_2 = arith.constant 0 : index
    %4 = vector.load %arg1[%c0, %c0_1, %c0_2] : memref<2x8x1xi32, #tpu.memory_space<vmem>>, vector<1x8x1xi32>
    %5 = vector.shape_cast %4 : vector<1x8x1xi32> to vector<8x1xi32>
    %c0_3 = arith.constant 0 : index
    %c0_4 = arith.constant 0 : index
    %c0_5 = arith.constant 0 : index
    %6 = vector.load %arg2[%c0_3, %c0_4, %c0_5] : memref<2x8x1xi32, #tpu.memory_space<vmem>>, vector<1x8x1xi32>
    %7 = vector.shape_cast %6 : vector<1x8x1xi32> to vector<8x1xi32>
    %c0_6 = arith.constant 0 : index
    %c0_7 = arith.constant 0 : index
    %c0_8 = arith.constant 0 : index
    %8 = vector.load %arg3[%c0_6, %c0_7, %c0_8] : memref<2x8x1xf32, #tpu.memory_space<vmem>>, vector<1x8x1xf32>
    %9 = vector.shape_cast %8 : vector<1x8x1xf32> to vector<8x1xf32>
    %c0_9 = arith.constant 0 : index
    %c0_10 = arith.constant 0 : index
    %c0_11 = arith.constant 0 : index
    %10 = vector.load %arg5[%c0_9, %c0_10, %c0_11] : memref<2x8x2xf32, #tpu.memory_space<vmem>>, vector<1x8x2xf32>
    %11 = vector.shape_cast %10 : vector<1x8x2xf32> to vector<8x2xf32>
    %12 = vector.broadcast %5 : vector<8x1xi32> to vector<8x2xi32>
    %13 = arith.cmpi eq, %0, %12 : vector<8x2xi32>
    %14 = arith.extui %13 : vector<8x2xi1> to vector<8x2xi32>
    %15 = arith.sitofp %14 : vector<8x2xi32> to vector<8x2xf32>
    %16 = vector.broadcast %7 : vector<8x1xi32> to vector<8x128xi32>
    %17 = arith.cmpi eq, %1, %16 : vector<8x128xi32>
    %18 = arith.extui %17 : vector<8x128xi1> to vector<8x128xi32>
    %19 = arith.sitofp %18 : vector<8x128xi32> to vector<8x128xf32>
    %c0_12 = arith.constant 0 : index
    %c0_13 = arith.constant 0 : index
    %c0_14 = arith.constant 0 : index
    %c0_15 = arith.constant 0 : index
    %20 = vector.load %arg4[%c0_12, %c0_13, %c0_14, %c0_15] : memref<2x2x2x128xf32, #tpu.memory_space<vmem>>, vector<1x1x2x128xf32>
    %21 = vector.shape_cast %20 : vector<1x1x2x128xf32> to vector<2x128xf32>
    %cst_16 = arith.constant dense<0.000000e+00> : vector<8x128xf32>
    %22 = tpu.matmul %15, %21, %cst_16 {dimension_numbers = #tpu.dot_dimension_numbers<[1], [0], [0], [1], [0, 0, 1, 1], [], []>, precision = #tpu.contract_precision<fp32>} : vector<8x2xf32>, vector<2x128xf32>, vector<8x128xf32> -> vector<8x128xf32>
    %23 = arith.mulf %22, %19 : vector<8x128xf32>
    %cst_17 = arith.constant dense<0.000000e+00> : vector<8xf32>
    %24 = vector.multi_reduction <add>, %23, %cst_17 [1] : vector<8x128xf32> to vector<8xf32>
    %25 = vector.shape_cast %24 : vector<8xf32> to vector<8x1xf32>
    %26 = vector.extract_strided_slice %11 {offsets = [0, 0], sizes = [8, 1], strides = [1, 1]} : vector<8x2xf32> to vector<8x1xf32>
    %27 = arith.subf %25, %26 : vector<8x1xf32>
    %28 = math.absf %27 : vector<8x1xf32>
    %cst_18 = arith.constant 1.000000e+00 : f32
    %29 = vector.broadcast %cst_18 : f32 to vector<8x1xf32>
    %30 = arith.cmpf olt, %28, %29 : vector<8x1xf32>
    %cst_19 = arith.constant 5.000000e-01 : f32
    %31 = vector.broadcast %cst_19 : f32 to vector<8x1xf32>
    %32 = arith.mulf %31, %27 : vector<8x1xf32>
    %33 = arith.mulf %32, %27 : vector<8x1xf32>
    %cst_20 = arith.constant 5.000000e-01 : f32
    %34 = vector.broadcast %cst_20 : f32 to vector<8x1xf32>
    %35 = arith.subf %28, %34 : vector<8x1xf32>
    %36 = arith.select %30, %33, %35 : vector<8x1xi1>, vector<8x1xf32>
    %37 = arith.mulf %36, %9 : vector<8x1xf32>
    %38 = vector.shape_cast %37 : vector<8x1xf32> to vector<1x8x1xf32>
    %cst_21 = arith.constant dense<0.000000e+00> : vector<1xf32>
    %39 = vector.multi_reduction <add>, %38, %cst_21 [1, 2] : vector<1x8x1xf32> to vector<1xf32>
    %40 = vector.shape_cast %39 : vector<1xf32> to vector<1x1x1xf32>
    %41 = vector.extract %40[0, 0, 0] : f32 from vector<1x1x1xf32>
    %42 = vector.broadcast %41 : f32 to vector<1x1xf32>
    %43 = arith.addf %2, %42 : vector<1x1xf32>
    %c0_22 = arith.constant 0 : index
    %c1 = arith.constant 1 : index
    %c0_23 = arith.constant 0 : index
    %c0_24 = arith.constant 0 : index
    %44 = vector.load %arg4[%c0_22, %c1, %c0_23, %c0_24] : memref<2x2x2x128xf32, #tpu.memory_space<vmem>>, vector<1x1x2x128xf32>
    %45 = vector.shape_cast %44 : vector<1x1x2x128xf32> to vector<2x128xf32>
    %cst_25 = arith.constant dense<0.000000e+00> : vector<8x128xf32>
    %46 = tpu.matmul %15, %45, %cst_25 {dimension_numbers = #tpu.dot_dimension_numbers<[1], [0], [0], [1], [0, 0, 1, 1], [], []>, precision = #tpu.contract_precision<fp32>} : vector<8x2xf32>, vector<2x128xf32>, vector<8x128xf32> -> vector<8x128xf32>
    %47 = arith.mulf %46, %19 : vector<8x128xf32>
    %cst_26 = arith.constant dense<0.000000e+00> : vector<8xf32>
    %48 = vector.multi_reduction <add>, %47, %cst_26 [1] : vector<8x128xf32> to vector<8xf32>
    %49 = vector.shape_cast %48 : vector<8xf32> to vector<8x1xf32>
    %50 = vector.extract_strided_slice %11 {offsets = [0, 1], sizes = [8, 1], strides = [1, 1]} : vector<8x2xf32> to vector<8x1xf32>
    %51 = arith.subf %49, %50 : vector<8x1xf32>
    %52 = math.absf %51 : vector<8x1xf32>
    %cst_27 = arith.constant 1.000000e+00 : f32
    %53 = vector.broadcast %cst_27 : f32 to vector<8x1xf32>
    %54 = arith.cmpf olt, %52, %53 : vector<8x1xf32>
    %cst_28 = arith.constant 5.000000e-01 : f32
    %55 = vector.broadcast %cst_28 : f32 to vector<8x1xf32>
    %56 = arith.mulf %55, %51 : vector<8x1xf32>
    %57 = arith.mulf %56, %51 : vector<8x1xf32>
    %cst_29 = arith.constant 5.000000e-01 : f32
    %58 = vector.broadcast %cst_29 : f32 to vector<8x1xf32>
    %59 = arith.subf %52, %58 : vector<8x1xf32>
    %60 = arith.select %54, %57, %59 : vector<8x1xi1>, vector<8x1xf32>
    %61 = arith.mulf %60, %9 : vector<8x1xf32>
    %62 = vector.shape_cast %61 : vector<8x1xf32> to vector<1x8x1xf32>
    %cst_30 = arith.constant dense<0.000000e+00> : vector<1xf32>
    %63 = vector.multi_reduction <add>, %62, %cst_30 [1, 2] : vector<1x8x1xf32> to vector<1xf32>
    %64 = vector.shape_cast %63 : vector<1xf32> to vector<1x1x1xf32>
    %65 = vector.extract %64[0, 0, 0] : f32 from vector<1x1x1xf32>
    %66 = vector.broadcast %65 : f32 to vector<1x1xf32>
    %67 = arith.addf %43, %66 : vector<1x1xf32>
    %68 = vector.shape_cast %9 : vector<8x1xf32> to vector<1x8x1xf32>
    %cst_31 = arith.constant dense<0.000000e+00> : vector<1xf32>
    %69 = vector.multi_reduction <add>, %68, %cst_31 [1, 2] : vector<1x8x1xf32> to vector<1xf32>
    %70 = vector.shape_cast %69 : vector<1xf32> to vector<1x1x1xf32>
    %71 = vector.extract %70[0, 0, 0] : f32 from vector<1x1x1xf32>
    %72 = vector.broadcast %71 : f32 to vector<1x1xf32>
    %73 = arith.addf %3, %72 : vector<1x1xf32>
    %c1_32 = arith.constant 1 : index
    %c0_33 = arith.constant 0 : index
    %c0_34 = arith.constant 0 : index
    %74 = vector.load %arg1[%c1_32, %c0_33, %c0_34] : memref<2x8x1xi32, #tpu.memory_space<vmem>>, vector<1x8x1xi32>
    %75 = vector.shape_cast %74 : vector<1x8x1xi32> to vector<8x1xi32>
    %c1_35 = arith.constant 1 : index
    %c0_36 = arith.constant 0 : index
    %c0_37 = arith.constant 0 : index
    %76 = vector.load %arg2[%c1_35, %c0_36, %c0_37] : memref<2x8x1xi32, #tpu.memory_space<vmem>>, vector<1x8x1xi32>
    %77 = vector.shape_cast %76 : vector<1x8x1xi32> to vector<8x1xi32>
    %c1_38 = arith.constant 1 : index
    %c0_39 = arith.constant 0 : index
    %c0_40 = arith.constant 0 : index
    %78 = vector.load %arg3[%c1_38, %c0_39, %c0_40] : memref<2x8x1xf32, #tpu.memory_space<vmem>>, vector<1x8x1xf32>
    %79 = vector.shape_cast %78 : vector<1x8x1xf32> to vector<8x1xf32>
    %c1_41 = arith.constant 1 : index
    %c0_42 = arith.constant 0 : index
    %c0_43 = arith.constant 0 : index
    %80 = vector.load %arg5[%c1_41, %c0_42, %c0_43] : memref<2x8x2xf32, #tpu.memory_space<vmem>>, vector<1x8x2xf32>
    %81 = vector.shape_cast %80 : vector<1x8x2xf32> to vector<8x2xf32>
    %82 = vector.broadcast %75 : vector<8x1xi32> to vector<8x2xi32>
    %83 = arith.cmpi eq, %0, %82 : vector<8x2xi32>
    %84 = arith.extui %83 : vector<8x2xi1> to vector<8x2xi32>
    %85 = arith.sitofp %84 : vector<8x2xi32> to vector<8x2xf32>
    %86 = vector.broadcast %77 : vector<8x1xi32> to vector<8x128xi32>
    %87 = arith.cmpi eq, %1, %86 : vector<8x128xi32>
    %88 = arith.extui %87 : vector<8x128xi1> to vector<8x128xi32>
    %89 = arith.sitofp %88 : vector<8x128xi32> to vector<8x128xf32>
    %c1_44 = arith.constant 1 : index
    %c0_45 = arith.constant 0 : index
    %c0_46 = arith.constant 0 : index
    %c0_47 = arith.constant 0 : index
    %90 = vector.load %arg4[%c1_44, %c0_45, %c0_46, %c0_47] : memref<2x2x2x128xf32, #tpu.memory_space<vmem>>, vector<1x1x2x128xf32>
    %91 = vector.shape_cast %90 : vector<1x1x2x128xf32> to vector<2x128xf32>
    %cst_48 = arith.constant dense<0.000000e+00> : vector<8x128xf32>
    %92 = tpu.matmul %85, %91, %cst_48 {dimension_numbers = #tpu.dot_dimension_numbers<[1], [0], [0], [1], [0, 0, 1, 1], [], []>, precision = #tpu.contract_precision<fp32>} : vector<8x2xf32>, vector<2x128xf32>, vector<8x128xf32> -> vector<8x128xf32>
    %93 = arith.mulf %92, %89 : vector<8x128xf32>
    %cst_49 = arith.constant dense<0.000000e+00> : vector<8xf32>
    %94 = vector.multi_reduction <add>, %93, %cst_49 [1] : vector<8x128xf32> to vector<8xf32>
    %95 = vector.shape_cast %94 : vector<8xf32> to vector<8x1xf32>
    %96 = vector.extract_strided_slice %81 {offsets = [0, 0], sizes = [8, 1], strides = [1, 1]} : vector<8x2xf32> to vector<8x1xf32>
    %97 = arith.subf %95, %96 : vector<8x1xf32>
    %98 = math.absf %97 : vector<8x1xf32>
    %cst_50 = arith.constant 1.000000e+00 : f32
    %99 = vector.broadcast %cst_50 : f32 to vector<8x1xf32>
    %100 = arith.cmpf olt, %98, %99 : vector<8x1xf32>
    %cst_51 = arith.constant 5.000000e-01 : f32
    %101 = vector.broadcast %cst_51 : f32 to vector<8x1xf32>
    %102 = arith.mulf %101, %97 : vector<8x1xf32>
    %103 = arith.mulf %102, %97 : vector<8x1xf32>
    %cst_52 = arith.constant 5.000000e-01 : f32
    %104 = vector.broadcast %cst_52 : f32 to vector<8x1xf32>
    %105 = arith.subf %98, %104 : vector<8x1xf32>
    %106 = arith.select %100, %103, %105 : vector<8x1xi1>, vector<8x1xf32>
    %107 = arith.mulf %106, %79 : vector<8x1xf32>
    %108 = vector.shape_cast %107 : vector<8x1xf32> to vector<1x8x1xf32>
    %cst_53 = arith.constant dense<0.000000e+00> : vector<1xf32>
    %109 = vector.multi_reduction <add>, %108, %cst_53 [1, 2] : vector<1x8x1xf32> to vector<1xf32>
    %110 = vector.shape_cast %109 : vector<1xf32> to vector<1x1x1xf32>
    %111 = vector.extract %110[0, 0, 0] : f32 from vector<1x1x1xf32>
    %112 = vector.broadcast %111 : f32 to vector<1x1xf32>
    %113 = arith.addf %67, %112 : vector<1x1xf32>
    %c1_54 = arith.constant 1 : index
    %c1_55 = arith.constant 1 : index
    %c0_56 = arith.constant 0 : index
    %c0_57 = arith.constant 0 : index
    %114 = vector.load %arg4[%c1_54, %c1_55, %c0_56, %c0_57] : memref<2x2x2x128xf32, #tpu.memory_space<vmem>>, vector<1x1x2x128xf32>
    %115 = vector.shape_cast %114 : vector<1x1x2x128xf32> to vector<2x128xf32>
    %cst_58 = arith.constant dense<0.000000e+00> : vector<8x128xf32>
    %116 = tpu.matmul %85, %115, %cst_58 {dimension_numbers = #tpu.dot_dimension_numbers<[1], [0], [0], [1], [0, 0, 1, 1], [], []>, precision = #tpu.contract_precision<fp32>} : vector<8x2xf32>, vector<2x128xf32>, vector<8x128xf32> -> vector<8x128xf32>
    %117 = arith.mulf %116, %89 : vector<8x128xf32>
    %cst_59 = arith.constant dense<0.000000e+00> : vector<8xf32>
    %118 = vector.multi_reduction <add>, %117, %cst_59 [1] : vector<8x128xf32> to vector<8xf32>
    %119 = vector.shape_cast %118 : vector<8xf32> to vector<8x1xf32>
    %120 = vector.extract_strided_slice %81 {offsets = [0, 1], sizes = [8, 1], strides = [1, 1]} : vector<8x2xf32> to vector<8x1xf32>
    %121 = arith.subf %119, %120 : vector<8x1xf32>
    %122 = math.absf %121 : vector<8x1xf32>
    %cst_60 = arith.constant 1.000000e+00 : f32
    %123 = vector.broadcast %cst_60 : f32 to vector<8x1xf32>
    %124 = arith.cmpf olt, %122, %123 : vector<8x1xf32>
    %cst_61 = arith.constant 5.000000e-01 : f32
    %125 = vector.broadcast %cst_61 : f32 to vector<8x1xf32>
    %126 = arith.mulf %125, %121 : vector<8x1xf32>
    %127 = arith.mulf %126, %121 : vector<8x1xf32>
    %cst_62 = arith.constant 5.000000e-01 : f32
    %128 = vector.broadcast %cst_62 : f32 to vector<8x1xf32>
    %129 = arith.subf %122, %128 : vector<8x1xf32>
    %130 = arith.select %124, %127, %129 : vector<8x1xi1>, vector<8x1xf32>
    %131 = arith.mulf %130, %79 : vector<8x1xf32>
    %132 = vector.shape_cast %131 : vector<8x1xf32> to vector<1x8x1xf32>
    %cst_63 = arith.constant dense<0.000000e+00> : vector<1xf32>
    %133 = vector.multi_reduction <add>, %132, %cst_63 [1, 2] : vector<1x8x1xf32> to vector<1xf32>
    %134 = vector.shape_cast %133 : vector<1xf32> to vector<1x1x1xf32>
    %135 = vector.extract %134[0, 0, 0] : f32 from vector<1x1x1xf32>
    %136 = vector.broadcast %135 : f32 to vector<1x1xf32>
    %137 = arith.addf %113, %136 : vector<1x1xf32>
    %138 = vector.shape_cast %79 : vector<8x1xf32> to vector<1x8x1xf32>
    %cst_64 = arith.constant dense<0.000000e+00> : vector<1xf32>
    %139 = vector.multi_reduction <add>, %138, %cst_64 [1, 2] : vector<1x8x1xf32> to vector<1xf32>
    %140 = vector.shape_cast %139 : vector<1xf32> to vector<1x1x1xf32>
    %141 = vector.extract %140[0, 0, 0] : f32 from vector<1x1x1xf32>
    %142 = vector.broadcast %141 : f32 to vector<1x1xf32>
    %143 = arith.addf %73, %142 : vector<1x1xf32>
    %144 = tpu.iota {dimensions = array<i32: 1>} : vector<1x2xi32>
    %c0_i32 = arith.constant 0 : i32
    %145 = vector.broadcast %c0_i32 : i32 to vector<1x2xi32>
    %146 = arith.cmpi eq, %144, %145 : vector<1x2xi32>
    %147 = vector.shape_cast %137 : vector<1x1xf32> to vector<1x1xf32>
    %148 = vector.broadcast %147 : vector<1x1xf32> to vector<1x2xf32>
    %149 = vector.shape_cast %143 : vector<1x1xf32> to vector<1x1xf32>
    %150 = vector.broadcast %149 : vector<1x1xf32> to vector<1x2xf32>
    %151 = arith.select %146, %148, %150 : vector<1x2xi1>, vector<1x2xf32>
    %c0_65 = arith.constant 0 : index
    %c0_66 = arith.constant 0 : index
    %152 = vector.load %arg6[%c0_65, %c0_66] : memref<1x2xf32, #tpu.memory_space<vmem>>, vector<1x2xf32>
    tpu.vector_store %arg6[%c0_65, %c0_66], %151 {strides = array<i32>} : memref<1x2xf32, #tpu.memory_space<vmem>>, vector<1x2xf32>,
    return
  }
  func.func @transform_0(%arg0: i32) -> (i32, i32, i32) {
    %c0_i32 = arith.constant 0 : i32
    %c0_i32_0 = arith.constant 0 : i32
    %c0_i32_1 = arith.constant 0 : i32
    return %arg0, %c0_i32, %c0_i32_0 : i32, i32, i32
  }
  func.func @transform_1(%arg0: i32) -> (i32, i32, i32) {
    %c0_i32 = arith.constant 0 : i32
    %c0_i32_0 = arith.constant 0 : i32
    %c0_i32_1 = arith.constant 0 : i32
    return %arg0, %c0_i32, %c0_i32_0 : i32, i32, i32
  }
  func.func @transform_2(%arg0: i32) -> (i32, i32, i32) {
    %c0_i32 = arith.constant 0 : i32
    %c0_i32_0 = arith.constant 0 : i32
    %c0_i32_1 = arith.constant 0 : i32
    return %arg0, %c0_i32, %c0_i32_0 : i32, i32, i32
  }
  func.func @transform_3(%arg0: i32) -> (i32, i32, i32, i32) {
    %c0_i32 = arith.constant 0 : i32
    %c0_i32_0 = arith.constant 0 : i32
    %c0_i32_1 = arith.constant 0 : i32
    %c0_i32_2 = arith.constant 0 : i32
    return %arg0, %c0_i32, %c0_i32_0, %c0_i32_1 : i32, i32, i32, i32
  }
  func.func @transform_4(%arg0: i32) -> (i32, i32, i32) {
    %c0_i32 = arith.constant 0 : i32
    %c0_i32_0 = arith.constant 0 : i32
    %c0_i32_1 = arith.constant 0 : i32
    return %arg0, %c0_i32, %c0_i32_0 : i32, i32, i32
  }
  func.func @transform_5(%arg0: i32) -> (i32, i32) {
    %c0_i32 = arith.constant 0 : i32
    %c0_i32_0 = arith.constant 0 : i32
    return %arg0, %c0_i32 : i32, i32
  }
}

</mosaic_0001>

<bundles_post_ra>
// kernel: tpu_custom_call.1
= control target key start
LH: loop header
LB: loop body
LE: loop exit
PB: predicated region body
PF: predicated region fallthrough
CT: control target
= control target key end

     0   :  { %s2533_s0 = inlined_call_operand.vmem [shape: s32[2,8,1], index: 0, kind: input, shape index: {}]   ;;  %s2534_s1 = inlined_call_operand.vmem [shape: s32[2,8,1], index: 1, kind: input, shape index: {}]   ;;  %s2535_s2 = inlined_call_operand.vmem [shape: f32[2,8,1], index: 2, kind: input, shape index: {}]   ;;  %s2536_s3 = inlined_call_operand.vmem [shape: f32[2,2,2,128], index: 3, kind: input, shape index: {}]   ;;  %s2537_s4 = inlined_call_operand.vmem [shape: f32[2,8,2], index: 4, kind: input, shape index: {}]   ;;  %s2538_s5 = inlined_call_operand.hbm [shape: f32[1,2], index: 5, kind: output, shape index: {}]  }
   0x1   :  { %v23_v0 = vld [vmem:[%s2533_s0] sm:$0xff] }
   0x2   :  { %10 = vsyncpa [#allocation3], 0  ;;  %v2300_v1 = vmov 0   ;;  %v2301_v2 = vmov 0.0   ;;  %v2032_v3 = vld [vmem:[%s2533_s0 + $0x8] sm:$0xff]  ;;  %vm44_vm0 = vcmask 1041408   ;;  %v21_v12 = vlaneseq }
   0x3   :  { %2274 = vset.pattern.permute.xlu0 %v2300_v1  ;;  %2126 = vmatprep.subr.mxu1 %v2301_v2  ;;  %v2027_v4 = vld [vmem:[%s2536_s3 + $0x2] sm:$0x3]  ;;  %v39_v5 = vld [vmem:[%s2536_s3] sm:$0x3]  ;;  %vm2302_vm1 = vmmov 0   ;;  %v2033_v11 = vld [vmem:[%s2534_s1 + $0x8] sm:$0xff] }
   0x4   :  { %28 = vperm.xlu0 %2274, %v23_v0   ;;  %2096 = vmatprep.subr.mxu0 %v2301_v2  ;;  %v521_v6 = vsel %vm44_vm0, %v2027_v4, 0  ;;  %v46_v7 = vsel %vm44_vm0, %v39_v5, 0  ;;  %v24_v10 = vld [vmem:[%s2534_s1] sm:$0xff]  ;;  %v2370_v13 = vand.u32 127, %v21_v12  ;;  %vm40_vm2 = vcmask 15360   ;;  %s2303_s8 = smov 1  }
   0x5   :  { %2275 = vset.pattern.permute.xlu1 %v2300_v1  ;;  %v2352_v8 = vand.u32 4294901760, %v521_v6  ;;  %v2354_v9 = vand.u32 4294901760, %v46_v7  ;;  %2098 = vmatprep.mubr.msk.f32.mxu0 %vm2302_vm1, %v2301_v2  ;;  %v2043_v30 = vld [vmem:[%s2536_s3 + $0x6] sm:$0x3]  ;;  %v2038_v31 = vld [vmem:[%s2536_s3 + $0x4] sm:$0x3] }
   0x6   :  { %2128 = vmatprep.mubr.msk.f32.mxu1 %vm2302_vm1, %v2301_v2  ;;  %34 = vperm.xlu1 %2275, %v24_v10   ;;  %v1512_v32 = vsel %vm44_vm0, %v2043_v30, 0  ;;  %v1038_v33 = vsel %vm44_vm0, %v2038_v31, 0  ;;  %v25_v57 = vld [vmem:[%s2535_s2] sm:$0xff]  ;;  %s2304_s13 = smov 127   ;;  %vm505_vm10 = vcmask 7168   ;;  %s2305_s20 = smov [#allocation2]  }
   0x7   :  { %2127 = vmatpush3.msra.mxu1 %v2352_v8  ;;  %2097 = vmatpush3.msra.mxu0 %v2354_v9  ;;  %v601_v14 = vsub.f32 %v521_v6, %v2352_v8  ;;  %v126_v15 = vsub.f32 %v46_v7, %v2354_v9  ;;  %v2416_v35 = vand.u32 4294901760, %v1512_v32  ;;  %v2418_v36 = vand.u32 4294901760, %v1038_v33  ;;  %v26_v5 = vld [vmem:[%s2537_s4] sm:$0xff]  ;;  %s2013_s21 = sshll.u32 %s2305_s20, 4  ;;  %s2014_s21 = int_to_ptr.vmem [resolvable:$true] %s2013_s21 }
   0x8   :  { %1021 = vperm.xlu0 %2274, %v2032_v3   ;;  %2131 = vmatprep.subr.mxu1 %v2301_v2  ;;  %v2034_v3 = vld [vmem:[%s2535_s2 + $0x8] sm:$0xff]  ;;  %vm2003_vm12 = vcmp.eq.s32.totalorder %v2370_v13, 0  ;;  %vm2005_vm13 = vcmask 8192   ;;  %s2276_s22 = scalar_lea.vmem %s2014_s21, 16  ;;  %s2280_s23 = scalar_lea.vmem %s2014_s21, 32 }
   0x9   :  { %2101 = vmatprep.subr.mxu0 %v2301_v2  ;;  %v602_v17 = vand.u32 4294901760, %v601_v14  ;;  %v127_v18 = vand.u32 4294901760, %v126_v15  ;;  %v1592_v38 = vsub.f32 %v1512_v32, %v2416_v35  ;;  %v1118_v39 = vsub.f32 %v1038_v33, %v2418_v36  ;;  %p2277_p0 = scmp.ne.s32.totalorder %s2014_s21, %s2276_s22  ;;  %p2281_p1 = scmp.lt.s32.totalorder %s2014_s21, %s2014_s21 }
   0xa   :  { %1027 = vperm.xlu1 %2275, %v2033_v11   ;;  %p2282_p2 = scmp.lt.s32.totalorder %s2280_s23, %s2276_s22 }
   0xb   :  { %v603_v22 = vsub.f32 %v601_v14, %v602_v17  ;;  %v128_v23 = vsub.f32 %v126_v15, %v127_v18  ;;  %v1593_v41 = vand.u32 4294901760, %v1592_v38  ;;  %v1119_v42 = vand.u32 4294901760, %v1118_v39 }
   0xc   :  { %p2283_p3 = por %p2282_p2, %p2281_p1 }
   0xd   :  { %v604_v26 = vand.u32 4294901760, %v603_v22  ;;  %v129_v27 = vand.u32 4294901760, %v128_v23  ;;  %v1594_v44 = vsub.f32 %v1592_v38, %v1593_v41  ;;  %v1120_v45 = vsub.f32 %v1118_v39, %v1119_v42 }
   0xe   :  { %p2284_p4 = pnand %p2283_p3, %p2277_p0 }
   0xf   :  { %v1595_v47 = vand.u32 4294901760, %v1594_v44  ;;  %v1121_v48 = vand.u32 4294901760, %v1120_v45  ;;  %v1991_v44 = vsel %vm505_vm10, %v2034_v3, 0.0 }
  0x83   :  { %v29_v16 = vpop.permute.xlu0 %28 }
  0x84   :  { %vm30_vm3 = vcmp.eq.s32.totalorder %v2370_v13, %v29_v16 }
  0x85   :  { %v2376_v19 = vsel %vm30_vm3, 1.0, %v2301_v2  ;;  %v35_v50 = vpop.permute.xlu1 %34 }
  0x86   :  { %v42_v20 = vsel %vm40_vm2, %v2376_v19, 0  ;;  %vm36_vm5 = vcmp.eq.s32.totalorder %v2370_v13, %v35_v50 }
  0x87   :  { %v115_v21 = vsub.f32 %v42_v20, %v42_v20  ;;  %v1022_v29 = vpop.permute.xlu0 %1021  ;;  %v2022_v51 = vsel %vm36_vm5, 1.0, %v2301_v2 }
  0x88   :  { %vm1023_vm4 = vcmp.eq.s32.totalorder %v2370_v13, %v1022_v29 }
  0x89   :  { %v116_v24 = vand.u32 4294901760, %v115_v21  ;;  %v2414_v34 = vsel %vm1023_vm4, 1.0, %v2301_v2  ;;  %v1028_v58 = vpop.permute.xlu1 %1027 }
  0x8a   :  { %v1035_v37 = vsel %vm40_vm2, %v2414_v34, 0  ;;  %vm1029_vm6 = vcmp.eq.s32.totalorder %v2370_v13, %v1028_v58 }
  0x8b   :  { %v117_v25 = vsub.f32 %v115_v21, %v116_v24  ;;  %v1107_v40 = vsub.f32 %v1035_v37, %v1035_v37  ;;  %v2037_v59 = vsel %vm1029_vm6, 1.0, %v2301_v2 }
  0x8d   :  { %v118_v28 = vand.u32 4294901760, %v117_v25  ;;  %v1108_v43 = vand.u32 4294901760, %v1107_v40 }
  0x8f   :  { %2099 = vmatmul.mubr.f32.vlgmr.msra.gmra.mrb[0].mxu0 %v118_v28  ;;  %2129 = vmatmul.mubr.f32.vlgmr.msra.gmra.mrb[0].mxu1 %v118_v28  ;;  %v1109_v46 = vsub.f32 %v1107_v40, %v1108_v43 }
  0x90   :  { %2132 = vmatpush3.msra.mxu1 %v604_v26  ;;  %2102 = vmatpush3.msra.mxu0 %v129_v27 }
  0x91   :  { %2103 = vmatprep.mubr.msk.f32.mxu0 %vm2302_vm1, %v2301_v2  ;;  %2133 = vmatprep.mubr.msk.f32.mxu1 %vm2302_vm1, %v2301_v2  ;;  %v1110_v49 = vand.u32 4294901760, %v1109_v46 }
  0x92   :  { %2136 = vmatprep.subr.mxu1 %v2301_v2  ;;  %2106 = vmatprep.subr.mxu0 %v2301_v2 }
  0x97   :  { %2104 = vmatmul.mubr.msk.f32.vlgmr.msra.gmra.mrb[0].mxu0 %vm40_vm2, %v2376_v19  ;;  %2134 = vmatmul.mubr.msk.f32.vlgmr.msra.gmra.mrb[0].mxu1 %vm40_vm2, %v2376_v19 }
  0x98   :  { %2137 = vmatpush3.msra.mxu1 %v601_v14  ;;  %2107 = vmatpush3.msra.mxu0 %v126_v15  ;;  %v2035_v15 = vld [vmem:[%s2537_s4 + $0x8] sm:$0xff] }
  0x99   :  { %2108 = vmatprep.mubr.msk.f32.mxu0 %vm2302_vm1, %v2301_v2  ;;  %2138 = vmatprep.mubr.msk.f32.mxu1 %vm2302_vm1, %v2301_v2 }
  0x9a   :  { %2141 = vmatprep.subr.mxu1 %v2301_v2  ;;  %2111 = vmatprep.subr.mxu0 %v2301_v2 }
  0x9f   :  { %2109 = vmatmul.mubr.f32.vlgmr.msra.gmra.mrb[0].mxu0 %v115_v21  ;;  %2139 = vmatmul.mubr.f32.vlgmr.msra.gmra.mrb[0].mxu1 %v115_v21 }
  0xa0   :  { %2142 = vmatpush3.msra.mxu1 %v2352_v8  ;;  %2112 = vmatpush3.msra.mxu0 %v2354_v9 }
  0xa1   :  { %2113 = vmatprep.mubr.msk.f32.mxu0 %vm2302_vm1, %v2301_v2  ;;  %2143 = vmatprep.mubr.msk.f32.mxu1 %vm2302_vm1, %v2301_v2 }
  0xa2   :  { %2146 = vmatprep.subr.mxu1 %v2301_v2  ;;  %2116 = vmatprep.subr.mxu0 %v2301_v2 }
  0xa7   :  { %2114 = vmatmul.mubr.f32.vlgmr.msra.gmra.mrb[0].mxu0 %v116_v24  ;;  %2144 = vmatmul.mubr.f32.vlgmr.msra.gmra.mrb[0].mxu1 %v116_v24 }
  0xa8   :  { %2147 = vmatpush3.msra.mxu1 %v602_v17  ;;  %2117 = vmatpush3.msra.mxu0 %v127_v18 }
  0xa9   :  { %2118 = vmatprep.mubr.msk.f32.mxu0 %vm2302_vm1, %v2301_v2  ;;  %2148 = vmatprep.mubr.msk.f32.mxu1 %vm2302_vm1, %v2301_v2 }
  0xaa   :  { %2151 = vmatprep.subr.mxu1 %v2301_v2  ;;  %2121 = vmatprep.subr.mxu0 %v2301_v2 }
  0xaf   :  { %2119 = vmatmul.mubr.msk.f32.vlgmr.msra.gmra.mrb[0].mxu0 %vm40_vm2, %v2376_v19  ;;  %2149 = vmatmul.mubr.msk.f32.vlgmr.msra.gmra.mrb[0].mxu1 %vm40_vm2, %v2376_v19 }
  0xb0   :  { %2152 = vmatpush3.msra.mxu1 %v2352_v8  ;;  %2122 = vmatpush3.msra.mxu0 %v2354_v9 }
  0xb1   :  { %2123 = vmatprep.mubr.msk.f32.mxu0 %vm2302_vm1, %v2301_v2  ;;  %2153 = vmatprep.mubr.msk.f32.mxu1 %vm2302_vm1, %v2301_v2 }
  0xb2   :  { %2186 = vmatprep.subr.mxu1 %v2301_v2  ;;  %2156 = vmatprep.subr.mxu0 %v2301_v2 }
  0xb7   :  { %2124 = vmatmul.mubr.msk.f32.vlgmr.msra.gmra.mrb[0].mxu0 %vm40_vm2, %v2376_v19  ;;  %2154 = vmatmul.mubr.msk.f32.vlgmr.msra.gmra.mrb[0].mxu1 %vm40_vm2, %v2376_v19 }
  0xb8   :  { %2187 = vmatpush3.msra.mxu1 %v2416_v35  ;;  %2157 = vmatpush3.msra.mxu0 %v2418_v36 }
  0xb9   :  { %2158 = vmatprep.mubr.msk.f32.mxu0 %vm2302_vm1, %v2301_v2  ;;  %2188 = vmatprep.mubr.msk.f32.mxu1 %vm2302_vm1, %v2301_v2 }
  0xba   :  { %2191 = vmatprep.subr.mxu1 %v2301_v2  ;;  %2161 = vmatprep.subr.mxu0 %v2301_v2 }
  0xbb   :  { %2159 = vmatmul.mubr.f32.vlgmr.msra.gmra.mrb[2].mxu0 %v1110_v49  ;;  %2189 = vmatmul.mubr.f32.vlgmr.msra.gmra.mrb[2].mxu1 %v1110_v49 }
  0xbc   :  { %2192 = vmatpush3.msra.mxu1 %v1595_v47  ;;  %2162 = vmatpush3.msra.mxu0 %v1121_v48 }
  0xbd   :  { %2163 = vmatprep.mubr.msk.f32.mxu0 %vm2302_vm1, %v2301_v2  ;;  %2193 = vmatprep.mubr.msk.f32.mxu1 %vm2302_vm1, %v2301_v2 }
  0xbe   :  { %2196 = vmatprep.subr.mxu1 %v2301_v2  ;;  %2166 = vmatprep.subr.mxu0 %v2301_v2 }
  0xc3   :  { %2164 = vmatmul.mubr.msk.f32.vlgmr.msra.gmra.mrb[2].mxu0 %vm40_vm2, %v2414_v34  ;;  %2194 = vmatmul.mubr.msk.f32.vlgmr.msra.gmra.mrb[2].mxu1 %vm40_vm2, %v2414_v34 }
  0xc4   :  { %2197 = vmatpush3.msra.mxu1 %v1592_v38  ;;  %2167 = vmatpush3.msra.mxu0 %v1118_v39 }
  0xc5   :  { %2168 = vmatprep.mubr.msk.f32.mxu0 %vm2302_vm1, %v2301_v2  ;;  %2198 = vmatprep.mubr.msk.f32.mxu1 %vm2302_vm1, %v2301_v2 }
  0xc6   :  { %2201 = vmatprep.subr.mxu1 %v2301_v2  ;;  %2171 = vmatprep.subr.mxu0 %v2301_v2 }
  0xcb   :  { %2169 = vmatmul.mubr.f32.vlgmr.msra.gmra.mrb[2].mxu0 %v1107_v40  ;;  %2199 = vmatmul.mubr.f32.vlgmr.msra.gmra.mrb[2].mxu1 %v1107_v40 }
  0xcc   :  { %2202 = vmatpush3.msra.mxu1 %v2416_v35  ;;  %2172 = vmatpush3.msra.mxu0 %v2418_v36 }
  0xcd   :  { %2173 = vmatprep.mubr.msk.f32.mxu0 %vm2302_vm1, %v2301_v2  ;;  %2203 = vmatprep.mubr.msk.f32.mxu1 %vm2302_vm1, %v2301_v2 }
  0xce   :  { %2206 = vmatprep.subr.mxu1 %v2301_v2  ;;  %2176 = vmatprep.subr.mxu0 %v2301_v2 }
  0xd3   :  { %2174 = vmatmul.mubr.f32.vlgmr.msra.gmra.mrb[2].mxu0 %v1108_v43  ;;  %2204 = vmatmul.mubr.f32.vlgmr.msra.gmra.mrb[2].mxu1 %v1108_v43 }
  0xd4   :  { %2207 = vmatpush3.msra.mxu1 %v1593_v41  ;;  %2177 = vmatpush3.msra.mxu0 %v1119_v42 }
  0xd5   :  { %2178 = vmatprep.mubr.msk.f32.mxu0 %vm2302_vm1, %v2301_v2  ;;  %2208 = vmatprep.mubr.msk.f32.mxu1 %vm2302_vm1, %v2301_v2 }
  0xd6   :  { %2211 = vmatprep.subr.mxu1 %v2301_v2  ;;  %2181 = vmatprep.subr.mxu0 %v2301_v2 }
  0xdb   :  { %2179 = vmatmul.mubr.msk.f32.vlgmr.msra.gmra.mrb[2].mxu0 %vm40_vm2, %v2414_v34  ;;  %2209 = vmatmul.mubr.msk.f32.vlgmr.msra.gmra.mrb[2].mxu1 %vm40_vm2, %v2414_v34 }
  0xdc   :  { %2212 = vmatpush3.msra.mxu1 %v2416_v35  ;;  %2182 = vmatpush3.msra.mxu0 %v2418_v36 }
  0xdd   :  { %2183 = vmatprep.mubr.msk.f32.mxu0 %vm2302_vm1, %v2301_v2  ;;  %2213 = vmatprep.mubr.msk.f32.mxu1 %vm2302_vm1, %v2301_v2 }
  0xe3   :  { %2184 = vmatmul.mubr.msk.f32.vlgmr.msra.gmra.mrb[2].mxu0 %vm40_vm2, %v2414_v34  ;;  %2214 = vmatmul.mubr.msk.f32.vlgmr.msra.gmra.mrb[2].mxu1 %vm40_vm2, %v2414_v34  ;;  %v1000_v34 = vsel %vm505_vm10, %v25_v57, 0.0 }
 0x18a   :  { %v490_v52 = vpop.f32.mrb[0].mxu0  ;;  %v965_v53 = vpop.f32.mrb[0].mxu1 }
 0x18b   :  { %v969_v54 = vmul.f32 %v2022_v51, %v965_v53  ;;  %v2125_v55 = vpop.f32.mrb[1].mxu0  ;;  %v2155_v56 = vpop.f32.mrb[1].mxu1  ;;  %v494_v1 = vmul.f32 %v2022_v51, %v490_v52 }
 0x18d   :  { %970 = vadd.xlane.f32.xlu0 %v969_v54 }
 0x1a3   :  { %980 = vrot.lane.b32.xlu0 %v25_v57, %s2303_s8 }
 0x1b6   :  { %v1482_v60 = vpop.f32.mrb[2].mxu0  ;;  %v1956_v61 = vpop.f32.mrb[2].mxu1 }
 0x1b7   :  { %v1960_v62 = vmul.f32 %v2037_v59, %v1956_v61  ;;  %v2185_v63 = vpop.f32.mrb[3].mxu0  ;;  %v2215_v0 = vpop.f32.mrb[3].mxu1  ;;  %v1486_v4 = vmul.f32 %v2037_v59, %v1482_v60 }
 0x1b9   :  { %1961 = vadd.xlane.f32.xlu1 %v1960_v62 }
 0x1c2   :  { %495 = vadd.xlane.f32.xlu0 %v494_v1 }
 0x1ca   :  { %1971 = vrot.lane.b32.xlu1 %v2034_v3, %s2303_s8 }
 0x1ee   :  { %1487 = vadd.xlane.f32.xlu1 %v1486_v4 }
 0x21a   :  { %v971_v2 = vpop.xlane.xlu0 %970 }
 0x21b   :  { %v972_v6 = vsub.f32 %v971_v2, %v26_v5 }
 0x21d   :  { %v973_v7 = vand.u32 2147483647, %v972_v6  ;;  %v975_v8 = vmul.f32 0.5, %v972_v6 }
 0x21e   :  { %v981_v11 = vpop.permute.xlu0 %980 }
 0x21f   :  { %v976_v9 = vmul.f32 %v975_v8, %v972_v6  ;;  %vm974_vm7 = vcmp.lt.f32.partialorder %v973_v7, 1.0  ;;  %v2031_v10 = vadd.f32 -0.5, %v973_v7 }
 0x221   :  { %v978_v12 = vsel %vm974_vm7, %v976_v9, %v2031_v10 }
 0x222   :  { %v983_v14 = vmul.f32 %v981_v11, %v978_v12 }
 0x224   :  { %985 = vrot.lane.b32.xlu0 %v983_v14, %s2304_s13 }
 0x246   :  { %v1962_v16 = vpop.xlane.xlu1 %1961 }
 0x247   :  { %v1963_v17 = vsub.f32 %v1962_v16, %v2035_v15 }
 0x249   :  { %v1964_v18 = vand.u32 2147483647, %v1963_v17  ;;  %v1966_v19 = vmul.f32 0.5, %v1963_v17 }
 0x24a   :  { %v1972_v22 = vpop.permute.xlu1 %1971 }
 0x24b   :  { %v1967_v20 = vmul.f32 %v1966_v19, %v1963_v17  ;;  %vm1965_vm8 = vcmp.lt.f32.partialorder %v1964_v18, 1.0  ;;  %v2047_v21 = vadd.f32 -0.5, %v1964_v18 }
 0x24d   :  { %v1969_v23 = vsel %vm1965_vm8, %v1967_v20, %v2047_v21 }
 0x24e   :  { %v1974_v24 = vmul.f32 %v1972_v22, %v1969_v23 }
 0x24f   :  { %v496_v25 = vpop.xlane.xlu0 %495 }
 0x250   :  { %v497_v26 = vsub.f32 %v496_v25, %v26_v5  ;;  %1976 = vrot.lane.b32.xlu1 %v1974_v24, %s2304_s13 }
 0x252   :  { %v498_v27 = vand.u32 2147483647, %v497_v26  ;;  %v500_v28 = vmul.f32 0.5, %v497_v26 }
 0x254   :  { %v501_v29 = vmul.f32 %v500_v28, %v497_v26  ;;  %v2026_v30 = vadd.f32 -0.5, %v498_v27  ;;  %vm499_vm9 = vcmp.lt.f32.partialorder %v498_v27, 1.0 }
 0x256   :  { %v503_v31 = vsel %vm499_vm9, %v501_v29, %v2026_v30 }
 0x257   :  { %v504_v32 = vmul.f32 %v503_v31, %v25_v57 }
 0x259   :  { %v506_v33 = vsel %vm505_vm10, %v504_v32, 0.0 }
 0x25a   :  { %507 = vadd.xlane.f32.xlu0 %v506_v33 }
 0x25e   :  { %1001 = vadd.xlane.f32.xlu0 %v1000_v34 }
 0x27b   :  { %v1488_v35 = vpop.xlane.xlu1 %1487 }
 0x27c   :  { %v1489_v36 = vsub.f32 %v1488_v35, %v2035_v15 }
 0x27e   :  { %v1490_v37 = vand.u32 2147483647, %v1489_v36  ;;  %v1492_v38 = vmul.f32 0.5, %v1489_v36 }
 0x280   :  { %v1493_v39 = vmul.f32 %v1492_v38, %v1489_v36  ;;  %v2042_v40 = vadd.f32 -0.5, %v1490_v37  ;;  %vm1491_vm11 = vcmp.lt.f32.partialorder %v1490_v37, 1.0 }
 0x282   :  { %v1495_v41 = vsel %vm1491_vm11, %v1493_v39, %v2042_v40 }
 0x283   :  { %v1496_v42 = vmul.f32 %v2034_v3, %v1495_v41 }
 0x285   :  { %v1497_v43 = vsel %vm505_vm10, %v1496_v42, 0.0 }
 0x286   :  { %1498 = vadd.xlane.f32.xlu0 %v1497_v43 }
 0x28a   :  { %1992 = vadd.xlane.f32.xlu0 %v1991_v44 }
 0x296   :  { %v986_v45 = vpop.permute.xlu0 %985 }
 0x297   :  { %v988_v46 = vsel %vm505_vm10, %v986_v45, 0.0 }
 0x298   :  { %989 = vadd.xlane.f32.xlu1 %v988_v46 }
 0x2c2   :  { %v1977_v47 = vpop.permute.xlu1 %1976 }
 0x2c3   :  { %v1979_v48 = vsel %vm505_vm10, %v1977_v47, 0.0 }
 0x2c4   :  { %1980 = vadd.xlane.f32.xlu1 %v1979_v48 }
 0x2e7   :  { %v508_v49 = vpop.xlane.xlu0 %507 }
 0x2e8   :  { %v509_v50 = vrot.slane %v508_v49, 4 }
 0x2ea   :  { %v510_v51 = vadd.f32 %v509_v50, %v508_v49 }
 0x2eb   :  { %v1002_v56 = vpop.xlane.xlu0 %1001 }
 0x2ec   :  { %v511_v52 = vrot.slane %v510_v51, 2  ;;  %v1003_v57 = vrot.slane %v1002_v56, 4 }
 0x2ee   :  { %v512_v53 = vadd.f32 %v511_v52, %v510_v51  ;;  %v1004_v60 = vadd.f32 %v1003_v57, %v1002_v56 }
 0x2f0   :  { %v513_v54 = vrot.slane %v512_v53, 1  ;;  %v1005_v62 = vrot.slane %v1004_v60, 2 }
 0x2f2   :  { %v514_v55 = vadd.f32 %v513_v54, %v512_v53  ;;  %v1006_v3 = vadd.f32 %v1005_v62, %v1004_v60 }
 0x2f4   :  { %2256 = vpush %v514_v55  ;;  %v1007_v6 = vrot.slane %v1006_v3, 1 }
 0x2f6   :  { %v1008_v10 = vadd.f32 %v1007_v6, %v1006_v3 }
 0x313   :  { %v1499_v58 = vpop.xlane.xlu0 %1498 }
 0x314   :  { %v1500_v59 = vrot.slane %v1499_v58, 4 }
 0x316   :  { %v1501_v61 = vadd.f32 %v1500_v59, %v1499_v58 }
 0x317   :  { %v1993_v14 = vpop.xlane.xlu0 %1992 }
 0x318   :  { %v1502_v0 = vrot.slane %v1501_v61, 2  ;;  %v1994_v15 = vrot.slane %v1993_v14, 4 }
 0x31a   :  { %v1503_v2 = vadd.f32 %v1502_v0, %v1501_v61  ;;  %v1995_v16 = vadd.f32 %v1994_v15, %v1993_v14 }
 0x31c   :  { %v1504_v9 = vrot.slane %v1503_v2, 1  ;;  %v1996_v17 = vrot.slane %v1995_v16, 2 }
 0x31e   :  { %v1505_v12 = vadd.f32 %v1504_v9, %v1503_v2  ;;  %v1997_v21 = vadd.f32 %v1996_v17, %v1995_v16 }
 0x320   :  { %v1998_v24 = vrot.slane %v1997_v21, 1 }
 0x322   :  { %v1999_v27 = vadd.f32 %v1998_v24, %v1997_v21 }
 0x325   :  { %v990_v63 = vpop.xlane.xlu1 %989  ;;  %s2257_s4 = spop %2256 }
 0x326   :  { %v991_v1 = vrot.slane %v990_v63, 4  ;;  %v516_v29 = vstv %s2257_s4 }
 0x328   :  { %v992_v4 = vadd.f32 %v991_v1, %v990_v63 }
 0x32a   :  { %v993_v5 = vrot.slane %v992_v4, 2 }
 0x32c   :  { %v994_v7 = vadd.f32 %v993_v5, %v992_v4 }
 0x32e   :  { %v995_v8 = vrot.slane %v994_v7, 1 }
 0x330   :  { %v996_v11 = vadd.f32 %v995_v8, %v994_v7 }
 0x332   :  { %2258 = vpush %v996_v11 }
 0x333   :  { %2260 = vpush %v1008_v10 }
 0x334   :  { %2262 = vpush %v1505_v12 }
 0x351   :  { %v1981_v18 = vpop.xlane.xlu1 %1980 }
 0x352   :  { %v1982_v19 = vrot.slane %v1981_v18, 4 }
 0x354   :  { %v1983_v20 = vadd.f32 %v1982_v19, %v1981_v18 }
 0x356   :  { %v1984_v22 = vrot.slane %v1983_v20, 2 }
 0x358   :  { %v1985_v23 = vadd.f32 %v1984_v22, %v1983_v20 }
 0x35a   :  { %v1986_v25 = vrot.slane %v1985_v23, 1 }
 0x35c   :  { %v1987_v26 = vadd.f32 %v1986_v25, %v1985_v23 }
 0x35e   :  { %2264 = vpush %v1987_v26 }
 0x35f   :  { %2266 = vpush %v1999_v27 }
 0x363   :  { %s2259_s15 = spop %2258 }
 0x364   :  { %v998_v28 = vstv %s2259_s15  ;;  %s2261_s16 = spop %2260 }
 0x365   :  { %v999_v30 = vadd.f32 %v998_v28, %v516_v29  ;;  %s2263_s17 = spop %2262  ;;  %v1010_v34 = vstv %s2261_s16 }
 0x366   :  { %v1507_v31 = vstv %s2263_s17 }
 0x367   :  { %v1508_v32 = vadd.f32 %v1507_v31, %v999_v30 }
 0x38f   :  { %s2265_s18 = spop %2264 }
 0x390   :  { %v1989_v33 = vstv %s2265_s18  ;;  %s2267_s19 = spop %2266 }
 0x391   :  { %v1990_v35 = vadd.f32 %v1989_v33, %v1508_v32  ;;  %v2001_v36 = vstv %s2267_s19 }
 0x392   :  { %v2002_v37 = vadd.f32 %v2001_v36, %v1010_v34 }
 0x394   :  { %v2004_v38 = vsel %vm2003_vm12, %v1990_v35, %v2002_v37 }
 0x395   :  { %2006 = vst.msk [vmem:[#allocation2] sm:$0x1] %vm2005_vm13, %v2004_v38 }
 0x396   :  { %2287 = shalt.err (!%p2284_p4)
}
 0x397   :  { %s2288_s0 = scalar_lea.hbm %s2538_s5, 16 }
 0x398   :  { %p2289_p5 = scmp.ne.s32.totalorder %s2538_s5, %s2288_s0  ;;  %p2292_p6 = scmp.lt.u32.totalorder %s2288_s0, %s2538_s5 }
 0x39a   :  { %p2294_p7 = pnand %p2292_p6, %p2289_p5 }
 0x39c   :  { %2297 = shalt.err (!%p2294_p7)
}
 0x39d   :  { %2016 = dma.vmem_to_hbm [thread:$0]  %s2014_s21, 16, %s2538_s5, [#allocation3]  }
 0x39e   :  { %2298 = dma.done.wait [#allocation3], 16  }
 0x39f   :  { %2299 = vsyncadd [#allocation3], 4294967280 }
 0x3a0   :  { %2020 = vsyncpa [#allocation3], 1 }

</bundles_post_ra>
